<compile_context>
chip_gen: v7x
topology: tpu7x:2x2x1
jax: 0.10.0
libtpu: 0.0.40
codegen_flags: <defaults>
</compile_context>

<pallas_src>
import jax
import jax.numpy as jnp
from jax.experimental import pallas as pl
from jax.experimental.pallas import tpu as pltpu


def _choose_lane(hw: int) -> int:
    """Inner (lane) length dividing H*W, multiple of 128 when possible."""
    for lane in (512, 256, 128):            # prefer >= 8 sublane rows per slab
        if hw % lane == 0 and (hw // lane) % 8 == 0:
            return lane
    for lane in (128, 256, 512):            # lane-dense, fewer sublane rows
        if hw % lane == 0:
            return lane
    return hw                                # fallback: correct, just lane-padded


def _padded_slab_bytes(lead: int, s: int, lane: int, itemsize: int) -> int:
    s_pad = -(-s // 8) * 8
    l_pad = -(-lane // 128) * 128
    return lead * s_pad * l_pad * itemsize


def _choose_block_d(depth: int, per_slice_bytes: int,
                    budget_bytes: int = 4 << 20, max_pairs: int = 64) -> int:
    """Largest divisor of `depth` whose block fits the per-buffer VMEM budget."""
    limit = max(1, min(max_pairs, budget_bytes // max(1, per_slice_bytes)))
    best = 1
    for t in range(1, depth + 1):
        if depth % t == 0 and t <= limit:
            best = t
    return best


def _build_kernel(t_d: int, inv_norm: float, float_target: bool,
                  rtol: float = 1e-5, atol: float = 1e-8):
    inv_norm = float(inv_norm)

    def mask_sum(tc, tp):
        if float_target:                     # torch.isclose semantics (5-D target)
            a = tc.astype(jnp.float32)
            b = tp.astype(jnp.float32)
            m = jnp.abs(a - b) <= (jnp.float32(atol) + jnp.float32(rtol) * jnp.abs(b))
        else:                                # integer-label equality (4-D target)
            m = tc == tp
        return jnp.sum(m.astype(jnp.float32))

    def pair(xc, xp, tc, tp):
        d = xc - xp
        return jnp.sum(d * d) * mask_sum(tc, tp)

    def kernel(pred_ref, tgt_ref, acc_ref, prev_pred, prev_tgt):
        i = pl.program_id(0)

        @pl.when(i == 0)
        def _():
            acc_ref[0, 0] = jnp.float32(0.0)
            # Seed the carried slice with slice 0 so the boundary pair below
            # contributes exactly 0 on the first step (diff == 0).
            prev_pred[...] = pred_ref[:, 0:1].astype(jnp.float32)
            prev_tgt[...] = tgt_ref[:, 0:1]

        # Pair between this block's first slice and the previous block's last.
        partial = pair(pred_ref[:, 0:1].astype(jnp.float32), prev_pred[...],
                       tgt_ref[:, 0:1], prev_tgt[...])

        # Pairs fully inside this block (static unroll; t_d is small & bounded).
        for j in range(1, t_d):
            partial += pair(pred_ref[:, j:j + 1].astype(jnp.float32),
                            pred_ref[:, j - 1:j].astype(jnp.float32),
                            tgt_ref[:, j:j + 1], tgt_ref[:, j - 1:j])

        acc_ref[0, 0] += partial * jnp.float32(inv_norm)

        # Carry this block's last slice for the next step's boundary pair.
        prev_pred[...] = pred_ref[:, t_d - 1:t_d].astype(jnp.float32)
        prev_tgt[...] = tgt_ref[:, t_d - 1:t_d]

    return kernel


def temporal_consistency_loss(pred, target, weight: float = 0.2):
    """pred: (B, C, D, H, W) float.
    target: (B, D, H, W) labels (equality mask) or (B, C, D, H, W) float
    (torch.isclose mask). Labels may be any integer dtype; passing int8/int16
    labels further shrinks HBM traffic if the label cardinality allows it.
    """
    B, C, D, H, W = pred.shape
    if D <= 1:
        return jnp.float32(0.0)

    float_target = (target.ndim == 5)
    hw = H * W
    lane = _choose_lane(hw)
    sub = hw // lane

    lead_p = B * C
    lead_t = (B * C) if float_target else B
    n_pred = B * C * hw
    n_tgt = lead_t * hw

    # Free (no-transpose) reshapes: adjacent-axis merges/splits only.
    pred_r = pred.reshape(lead_p, D, sub, lane)
    tgt_r = target.reshape(lead_t, D, sub, lane)

    per_slice = (_padded_slab_bytes(lead_p, sub, lane, pred.dtype.itemsize)
                 + _padded_slab_bytes(lead_t, sub, lane, target.dtype.itemsize))
    t_d = _choose_block_d(D, per_slice)
    grid = (D // t_d,)

    inv_norm = 1.0 / (float(n_pred) * float(n_tgt))
    kernel = _build_kernel(t_d, inv_norm, float_target)

    acc = pl.pallas_call(
        kernel,
        out_shape=jax.ShapeDtypeStruct((1, 1), jnp.float32),
        grid_spec=pltpu.PrefetchScalarGridSpec(
            num_scalar_prefetch=0,
            grid=grid,
            in_specs=[
                pl.BlockSpec((lead_p, t_d, sub, lane), lambda i: (0, i, 0, 0)),
                pl.BlockSpec((lead_t, t_d, sub, lane), lambda i: (0, i, 0, 0)),
            ],
            out_specs=pl.BlockSpec((1, 1), lambda i: (0, 0),
                                   memory_space=pltpu.MemorySpace.SMEM),
            scratch_shapes=[
                pltpu.VMEM((lead_p, 1, sub, lane), jnp.float32),   # prev pred slice
                pltpu.VMEM((lead_t, 1, sub, lane), tgt_r.dtype),   # prev target slice
            ],
        ),
        # Carried prev-slice scratch + resident accumulator => sequential grid.
        # TODO(synk): v7x 2-TensorCore split of the D axis (per-core partial sums
        #             + explicit boundary pair) is not implemented; grid runs on one core.
        compiler_params=pltpu.CompilerParams(
            dimension_semantics=("arbitrary",)),
    )(pred_r, tgt_r)

    return jnp.float32(weight) * acc[0, 0]


def _reference_loss(pred, target, weight=0.2):
    """Pure-JAX reference mirroring the PyTorch forward (both target branches)."""
    D = pred.shape[2]
    total = jnp.float32(0.0)
    for d in range(1, D):
        diff = pred[:, :, d].astype(jnp.float32) - pred[:, :, d - 1].astype(jnp.float32)
        mse = jnp.mean(diff * diff)
        if target.ndim == 4:
            mask = (target[:, d] == target[:, d - 1]).astype(jnp.float32)
        else:
            mask = jnp.isclose(target[:, :, d], target[:, :, d - 1]).astype(jnp.float32)
        total = total + mse * jnp.mean(mask)
    return jnp.float32(weight) * total


if __name__ == "__main__":
    key = jax.random.PRNGKey(0)
    k_pred, k_tgt, k_tgt5 = jax.random.split(key, 3)

    B, C, D, H, W = 2, 4, 8, 16, 16
    pred = jax.random.normal(k_pred, (B, C, D, H, W), dtype=jnp.float32)

    # 4-D integer-label target branch.
    target = jax.random.randint(k_tgt, (B, D, H, W), 0, 3, dtype=jnp.int32)
    loss = jax.block_until_ready(temporal_consistency_loss(pred, target, weight=0.2))
    ref = jax.block_until_ready(_reference_loss(pred, target, weight=0.2))
    assert jnp.allclose(loss, ref, rtol=1e-5, atol=1e-6), (loss, ref)

    # 5-D float target branch (torch.isclose mask); quantised values so the
    # mask is non-trivial and far from the tolerance boundary.
    target5 = jnp.round(jax.random.normal(k_tgt5, (B, C, D, H, W), dtype=jnp.float32) * 1.5) / 2.0
    loss5 = jax.block_until_ready(temporal_consistency_loss(pred, target5, weight=0.2))
    ref5 = jax.block_until_ready(_reference_loss(pred, target5, weight=0.2))
    assert jnp.allclose(loss5, ref5, rtol=1e-5, atol=1e-6), (loss5, ref5)

    print("KERNEL_OK")
</pallas_src>

<mosaic_0001>
module attributes {stable_mosaic.version = 11 : i64} {
  func.func @kernel(%arg0: i32, %arg1: memref<8x8x2x128xf32, #tpu.memory_space<vmem>>, %arg2: memref<2x8x2x128xi32, #tpu.memory_space<vmem>>, %arg3: memref<1x1xf32, #tpu.memory_space<smem>>, %arg4: memref<8x1x2x128xf32, #tpu.memory_space<vmem>>, %arg5: memref<2x1x2x128xi32, #tpu.memory_space<vmem>>) attributes {dimension_semantics = [#tpu.dimension_semantics<arbitrary>], iteration_bounds = array<i64: 1>, scalar_prefetch = 0 : i64, scratch_operands = 2 : i64, tpu.core_type = #tpu.core_type<tc>, window_params = [{transform_indices = @transform_0, window_bounds = array<i64: 8, 8, 2, 128>}, {transform_indices = @transform_1, window_bounds = array<i64: 2, 8, 2, 128>}, {transform_indices = @transform_2, window_bounds = array<i64: 1, 1>}]} {
    %c0_i32 = arith.constant 0 : i32
    %0 = arith.cmpi eq, %arg0, %c0_i32 : i32
    %1 = arith.extui %0 : i1 to i32
    %c0_i32_0 = arith.constant 0 : i32
    %2 = arith.cmpi ne, %1, %c0_i32_0 : i32
    scf.if %2 {
      %cst_157 = arith.constant 0.000000e+00 : f32
      %c0_158 = arith.constant 0 : index
      %c0_159 = arith.constant 0 : index
      %162 = memref.load %arg3[%c0_158, %c0_159] : memref<1x1xf32, #tpu.memory_space<smem>>
      memref.store %cst_157, %arg3[%c0_158, %c0_159] : memref<1x1xf32, #tpu.memory_space<smem>>
      %c0_160 = arith.constant 0 : index
      %c0_161 = arith.constant 0 : index
      %c0_162 = arith.constant 0 : index
      %c0_163 = arith.constant 0 : index
      %163 = vector.load %arg1[%c0_160, %c0_161, %c0_162, %c0_163] : memref<8x8x2x128xf32, #tpu.memory_space<vmem>>, vector<8x1x2x128xf32>
      %c0_164 = arith.constant 0 : index
      %c0_165 = arith.constant 0 : index
      %c0_166 = arith.constant 0 : index
      %c0_167 = arith.constant 0 : index
      %164 = vector.load %arg4[%c0_164, %c0_165, %c0_166, %c0_167] : memref<8x1x2x128xf32, #tpu.memory_space<vmem>>, vector<8x1x2x128xf32>
      tpu.vector_store %arg4[%c0_164, %c0_165, %c0_166, %c0_167], %163 {strides = array<i32>} : memref<8x1x2x128xf32, #tpu.memory_space<vmem>>, vector<8x1x2x128xf32>,
      %c0_168 = arith.constant 0 : index
      %c0_169 = arith.constant 0 : index
      %c0_170 = arith.constant 0 : index
      %c0_171 = arith.constant 0 : index
      %165 = vector.load %arg2[%c0_168, %c0_169, %c0_170, %c0_171] : memref<2x8x2x128xi32, #tpu.memory_space<vmem>>, vector<2x1x2x128xi32>
      %c0_172 = arith.constant 0 : index
      %c0_173 = arith.constant 0 : index
      %c0_174 = arith.constant 0 : index
      %c0_175 = arith.constant 0 : index
      %166 = vector.load %arg5[%c0_172, %c0_173, %c0_174, %c0_175] : memref<2x1x2x128xi32, #tpu.memory_space<vmem>>, vector<2x1x2x128xi32>
      tpu.vector_store %arg5[%c0_172, %c0_173, %c0_174, %c0_175], %165 {strides = array<i32>} : memref<2x1x2x128xi32, #tpu.memory_space<vmem>>, vector<2x1x2x128xi32>,
    } else {
    }
    %c0 = arith.constant 0 : index
    %c0_1 = arith.constant 0 : index
    %c0_2 = arith.constant 0 : index
    %c0_3 = arith.constant 0 : index
    %3 = vector.load %arg1[%c0, %c0_1, %c0_2, %c0_3] : memref<8x8x2x128xf32, #tpu.memory_space<vmem>>, vector<8x1x2x128xf32>
    %c0_4 = arith.constant 0 : index
    %c0_5 = arith.constant 0 : index
    %c0_6 = arith.constant 0 : index
    %c0_7 = arith.constant 0 : index
    %4 = vector.load %arg4[%c0_4, %c0_5, %c0_6, %c0_7] : memref<8x1x2x128xf32, #tpu.memory_space<vmem>>, vector<8x1x2x128xf32>
    %c0_8 = arith.constant 0 : index
    %c0_9 = arith.constant 0 : index
    %c0_10 = arith.constant 0 : index
    %c0_11 = arith.constant 0 : index
    %5 = vector.load %arg2[%c0_8, %c0_9, %c0_10, %c0_11] : memref<2x8x2x128xi32, #tpu.memory_space<vmem>>, vector<2x1x2x128xi32>
    %c0_12 = arith.constant 0 : index
    %c0_13 = arith.constant 0 : index
    %c0_14 = arith.constant 0 : index
    %c0_15 = arith.constant 0 : index
    %6 = vector.load %arg5[%c0_12, %c0_13, %c0_14, %c0_15] : memref<2x1x2x128xi32, #tpu.memory_space<vmem>>, vector<2x1x2x128xi32>
    %7 = arith.subf %3, %4 : vector<8x1x2x128xf32>
    %8 = arith.mulf %7, %7 : vector<8x1x2x128xf32>
    %9 = vector.shape_cast %8 : vector<8x1x2x128xf32> to vector<1x8x1x2x128xf32>
    %cst = arith.constant dense<0.000000e+00> : vector<1xf32>
    %10 = vector.multi_reduction <add>, %9, %cst [1, 2, 3, 4] : vector<1x8x1x2x128xf32> to vector<1xf32>
    %11 = vector.shape_cast %10 : vector<1xf32> to vector<1x1x1x1x1xf32>
    %12 = vector.extract %11[0, 0, 0, 0, 0] : f32 from vector<1x1x1x1x1xf32>
    %13 = arith.cmpi eq, %5, %6 : vector<2x1x2x128xi32>
    %14 = arith.extui %13 : vector<2x1x2x128xi1> to vector<2x1x2x128xi32>
    %15 = arith.sitofp %14 : vector<2x1x2x128xi32> to vector<2x1x2x128xf32>
    %16 = vector.shape_cast %15 : vector<2x1x2x128xf32> to vector<1x2x1x2x128xf32>
    %cst_16 = arith.constant dense<0.000000e+00> : vector<1xf32>
    %17 = vector.multi_reduction <add>, %16, %cst_16 [1, 2, 3, 4] : vector<1x2x1x2x128xf32> to vector<1xf32>
    %18 = vector.shape_cast %17 : vector<1xf32> to vector<1x1x1x1x1xf32>
    %19 = vector.extract %18[0, 0, 0, 0, 0] : f32 from vector<1x1x1x1x1xf32>
    %20 = arith.mulf %12, %19 : f32
    %c0_17 = arith.constant 0 : index
    %c1 = arith.constant 1 : index
    %c0_18 = arith.constant 0 : index
    %c0_19 = arith.constant 0 : index
    %21 = vector.load %arg1[%c0_17, %c1, %c0_18, %c0_19] : memref<8x8x2x128xf32, #tpu.memory_space<vmem>>, vector<8x1x2x128xf32>
    %c0_20 = arith.constant 0 : index
    %c0_21 = arith.constant 0 : index
    %c0_22 = arith.constant 0 : index
    %c0_23 = arith.constant 0 : index
    %22 = vector.load %arg1[%c0_20, %c0_21, %c0_22, %c0_23] : memref<8x8x2x128xf32, #tpu.memory_space<vmem>>, vector<8x1x2x128xf32>
    %c0_24 = arith.constant 0 : index
    %c1_25 = arith.constant 1 : index
    %c0_26 = arith.constant 0 : index
    %c0_27 = arith.constant 0 : index
    %23 = vector.load %arg2[%c0_24, %c1_25, %c0_26, %c0_27] : memref<2x8x2x128xi32, #tpu.memory_space<vmem>>, vector<2x1x2x128xi32>
    %c0_28 = arith.constant 0 : index
    %c0_29 = arith.constant 0 : index
    %c0_30 = arith.constant 0 : index
    %c0_31 = arith.constant 0 : index
    %24 = vector.load %arg2[%c0_28, %c0_29, %c0_30, %c0_31] : memref<2x8x2x128xi32, #tpu.memory_space<vmem>>, vector<2x1x2x128xi32>
    %25 = arith.subf %21, %22 : vector<8x1x2x128xf32>
    %26 = arith.mulf %25, %25 : vector<8x1x2x128xf32>
    %27 = vector.shape_cast %26 : vector<8x1x2x128xf32> to vector<1x8x1x2x128xf32>
    %cst_32 = arith.constant dense<0.000000e+00> : vector<1xf32>
    %28 = vector.multi_reduction <add>, %27, %cst_32 [1, 2, 3, 4] : vector<1x8x1x2x128xf32> to vector<1xf32>
    %29 = vector.shape_cast %28 : vector<1xf32> to vector<1x1x1x1x1xf32>
    %30 = vector.extract %29[0, 0, 0, 0, 0] : f32 from vector<1x1x1x1x1xf32>
    %31 = arith.cmpi eq, %23, %24 : vector<2x1x2x128xi32>
    %32 = arith.extui %31 : vector<2x1x2x128xi1> to vector<2x1x2x128xi32>
    %33 = arith.sitofp %32 : vector<2x1x2x128xi32> to vector<2x1x2x128xf32>
    %34 = vector.shape_cast %33 : vector<2x1x2x128xf32> to vector<1x2x1x2x128xf32>
    %cst_33 = arith.constant dense<0.000000e+00> : vector<1xf32>
    %35 = vector.multi_reduction <add>, %34, %cst_33 [1, 2, 3, 4] : vector<1x2x1x2x128xf32> to vector<1xf32>
    %36 = vector.shape_cast %35 : vector<1xf32> to vector<1x1x1x1x1xf32>
    %37 = vector.extract %36[0, 0, 0, 0, 0] : f32 from vector<1x1x1x1x1xf32>
    %38 = arith.mulf %30, %37 : f32
    %39 = arith.addf %20, %38 : f32
    %c0_34 = arith.constant 0 : index
    %c2 = arith.constant 2 : index
    %c0_35 = arith.constant 0 : index
    %c0_36 = arith.constant 0 : index
    %40 = vector.load %arg1[%c0_34, %c2, %c0_35, %c0_36] : memref<8x8x2x128xf32, #tpu.memory_space<vmem>>, vector<8x1x2x128xf32>
    %c0_37 = arith.constant 0 : index
    %c1_38 = arith.constant 1 : index
    %c0_39 = arith.constant 0 : index
    %c0_40 = arith.constant 0 : index
    %41 = vector.load %arg1[%c0_37, %c1_38, %c0_39, %c0_40] : memref<8x8x2x128xf32, #tpu.memory_space<vmem>>, vector<8x1x2x128xf32>
    %c0_41 = arith.constant 0 : index
    %c2_42 = arith.constant 2 : index
    %c0_43 = arith.constant 0 : index
    %c0_44 = arith.constant 0 : index
    %42 = vector.load %arg2[%c0_41, %c2_42, %c0_43, %c0_44] : memref<2x8x2x128xi32, #tpu.memory_space<vmem>>, vector<2x1x2x128xi32>
    %c0_45 = arith.constant 0 : index
    %c1_46 = arith.constant 1 : index
    %c0_47 = arith.constant 0 : index
    %c0_48 = arith.constant 0 : index
    %43 = vector.load %arg2[%c0_45, %c1_46, %c0_47, %c0_48] : memref<2x8x2x128xi32, #tpu.memory_space<vmem>>, vector<2x1x2x128xi32>
    %44 = arith.subf %40, %41 : vector<8x1x2x128xf32>
    %45 = arith.mulf %44, %44 : vector<8x1x2x128xf32>
    %46 = vector.shape_cast %45 : vector<8x1x2x128xf32> to vector<1x8x1x2x128xf32>
    %cst_49 = arith.constant dense<0.000000e+00> : vector<1xf32>
    %47 = vector.multi_reduction <add>, %46, %cst_49 [1, 2, 3, 4] : vector<1x8x1x2x128xf32> to vector<1xf32>
    %48 = vector.shape_cast %47 : vector<1xf32> to vector<1x1x1x1x1xf32>
    %49 = vector.extract %48[0, 0, 0, 0, 0] : f32 from vector<1x1x1x1x1xf32>
    %50 = arith.cmpi eq, %42, %43 : vector<2x1x2x128xi32>
    %51 = arith.extui %50 : vector<2x1x2x128xi1> to vector<2x1x2x128xi32>
    %52 = arith.sitofp %51 : vector<2x1x2x128xi32> to vector<2x1x2x128xf32>
    %53 = vector.shape_cast %52 : vector<2x1x2x128xf32> to vector<1x2x1x2x128xf32>
    %cst_50 = arith.constant dense<0.000000e+00> : vector<1xf32>
    %54 = vector.multi_reduction <add>, %53, %cst_50 [1, 2, 3, 4] : vector<1x2x1x2x128xf32> to vector<1xf32>
    %55 = vector.shape_cast %54 : vector<1xf32> to vector<1x1x1x1x1xf32>
    %56 = vector.extract %55[0, 0, 0, 0, 0] : f32 from vector<1x1x1x1x1xf32>
    %57 = arith.mulf %49, %56 : f32
    %58 = arith.addf %39, %57 : f32
    %c0_51 = arith.constant 0 : index
    %c3 = arith.constant 3 : index
    %c0_52 = arith.constant 0 : index
    %c0_53 = arith.constant 0 : index
    %59 = vector.load %arg1[%c0_51, %c3, %c0_52, %c0_53] : memref<8x8x2x128xf32, #tpu.memory_space<vmem>>, vector<8x1x2x128xf32>
    %c0_54 = arith.constant 0 : index
    %c2_55 = arith.constant 2 : index
    %c0_56 = arith.constant 0 : index
    %c0_57 = arith.constant 0 : index
    %60 = vector.load %arg1[%c0_54, %c2_55, %c0_56, %c0_57] : memref<8x8x2x128xf32, #tpu.memory_space<vmem>>, vector<8x1x2x128xf32>
    %c0_58 = arith.constant 0 : index
    %c3_59 = arith.constant 3 : index
    %c0_60 = arith.constant 0 : index
    %c0_61 = arith.constant 0 : index
    %61 = vector.load %arg2[%c0_58, %c3_59, %c0_60, %c0_61] : memref<2x8x2x128xi32, #tpu.memory_space<vmem>>, vector<2x1x2x128xi32>
    %c0_62 = arith.constant 0 : index
    %c2_63 = arith.constant 2 : index
    %c0_64 = arith.constant 0 : index
    %c0_65 = arith.constant 0 : index
    %62 = vector.load %arg2[%c0_62, %c2_63, %c0_64, %c0_65] : memref<2x8x2x128xi32, #tpu.memory_space<vmem>>, vector<2x1x2x128xi32>
    %63 = arith.subf %59, %60 : vector<8x1x2x128xf32>
    %64 = arith.mulf %63, %63 : vector<8x1x2x128xf32>
    %65 = vector.shape_cast %64 : vector<8x1x2x128xf32> to vector<1x8x1x2x128xf32>
    %cst_66 = arith.constant dense<0.000000e+00> : vector<1xf32>
    %66 = vector.multi_reduction <add>, %65, %cst_66 [1, 2, 3, 4] : vector<1x8x1x2x128xf32> to vector<1xf32>
    %67 = vector.shape_cast %66 : vector<1xf32> to vector<1x1x1x1x1xf32>
    %68 = vector.extract %67[0, 0, 0, 0, 0] : f32 from vector<1x1x1x1x1xf32>
    %69 = arith.cmpi eq, %61, %62 : vector<2x1x2x128xi32>
    %70 = arith.extui %69 : vector<2x1x2x128xi1> to vector<2x1x2x128xi32>
    %71 = arith.sitofp %70 : vector<2x1x2x128xi32> to vector<2x1x2x128xf32>
    %72 = vector.shape_cast %71 : vector<2x1x2x128xf32> to vector<1x2x1x2x128xf32>
    %cst_67 = arith.constant dense<0.000000e+00> : vector<1xf32>
    %73 = vector.multi_reduction <add>, %72, %cst_67 [1, 2, 3, 4] : vector<1x2x1x2x128xf32> to vector<1xf32>
    %74 = vector.shape_cast %73 : vector<1xf32> to vector<1x1x1x1x1xf32>
    %75 = vector.extract %74[0, 0, 0, 0, 0] : f32 from vector<1x1x1x1x1xf32>
    %76 = arith.mulf %68, %75 : f32
    %77 = arith.addf %58, %76 : f32
    %c0_68 = arith.constant 0 : index
    %c4 = arith.constant 4 : index
    %c0_69 = arith.constant 0 : index
    %c0_70 = arith.constant 0 : index
    %78 = vector.load %arg1[%c0_68, %c4, %c0_69, %c0_70] : memref<8x8x2x128xf32, #tpu.memory_space<vmem>>, vector<8x1x2x128xf32>
    %c0_71 = arith.constant 0 : index
    %c3_72 = arith.constant 3 : index
    %c0_73 = arith.constant 0 : index
    %c0_74 = arith.constant 0 : index
    %79 = vector.load %arg1[%c0_71, %c3_72, %c0_73, %c0_74] : memref<8x8x2x128xf32, #tpu.memory_space<vmem>>, vector<8x1x2x128xf32>
    %c0_75 = arith.constant 0 : index
    %c4_76 = arith.constant 4 : index
    %c0_77 = arith.constant 0 : index
    %c0_78 = arith.constant 0 : index
    %80 = vector.load %arg2[%c0_75, %c4_76, %c0_77, %c0_78] : memref<2x8x2x128xi32, #tpu.memory_space<vmem>>, vector<2x1x2x128xi32>
    %c0_79 = arith.constant 0 : index
    %c3_80 = arith.constant 3 : index
    %c0_81 = arith.constant 0 : index
    %c0_82 = arith.constant 0 : index
    %81 = vector.load %arg2[%c0_79, %c3_80, %c0_81, %c0_82] : memref<2x8x2x128xi32, #tpu.memory_space<vmem>>, vector<2x1x2x128xi32>
    %82 = arith.subf %78, %79 : vector<8x1x2x128xf32>
    %83 = arith.mulf %82, %82 : vector<8x1x2x128xf32>
    %84 = vector.shape_cast %83 : vector<8x1x2x128xf32> to vector<1x8x1x2x128xf32>
    %cst_83 = arith.constant dense<0.000000e+00> : vector<1xf32>
    %85 = vector.multi_reduction <add>, %84, %cst_83 [1, 2, 3, 4] : vector<1x8x1x2x128xf32> to vector<1xf32>
    %86 = vector.shape_cast %85 : vector<1xf32> to vector<1x1x1x1x1xf32>
    %87 = vector.extract %86[0, 0, 0, 0, 0] : f32 from vector<1x1x1x1x1xf32>
    %88 = arith.cmpi eq, %80, %81 : vector<2x1x2x128xi32>
    %89 = arith.extui %88 : vector<2x1x2x128xi1> to vector<2x1x2x128xi32>
    %90 = arith.sitofp %89 : vector<2x1x2x128xi32> to vector<2x1x2x128xf32>
    %91 = vector.shape_cast %90 : vector<2x1x2x128xf32> to vector<1x2x1x2x128xf32>
    %cst_84 = arith.constant dense<0.000000e+00> : vector<1xf32>
    %92 = vector.multi_reduction <add>, %91, %cst_84 [1, 2, 3, 4] : vector<1x2x1x2x128xf32> to vector<1xf32>
    %93 = vector.shape_cast %92 : vector<1xf32> to vector<1x1x1x1x1xf32>
    %94 = vector.extract %93[0, 0, 0, 0, 0] : f32 from vector<1x1x1x1x1xf32>
    %95 = arith.mulf %87, %94 : f32
    %96 = arith.addf %77, %95 : f32
    %c0_85 = arith.constant 0 : index
    %c5 = arith.constant 5 : index
    %c0_86 = arith.constant 0 : index
    %c0_87 = arith.constant 0 : index
    %97 = vector.load %arg1[%c0_85, %c5, %c0_86, %c0_87] : memref<8x8x2x128xf32, #tpu.memory_space<vmem>>, vector<8x1x2x128xf32>
    %c0_88 = arith.constant 0 : index
    %c4_89 = arith.constant 4 : index
    %c0_90 = arith.constant 0 : index
    %c0_91 = arith.constant 0 : index
    %98 = vector.load %arg1[%c0_88, %c4_89, %c0_90, %c0_91] : memref<8x8x2x128xf32, #tpu.memory_space<vmem>>, vector<8x1x2x128xf32>
    %c0_92 = arith.constant 0 : index
    %c5_93 = arith.constant 5 : index
    %c0_94 = arith.constant 0 : index
    %c0_95 = arith.constant 0 : index
    %99 = vector.load %arg2[%c0_92, %c5_93, %c0_94, %c0_95] : memref<2x8x2x128xi32, #tpu.memory_space<vmem>>, vector<2x1x2x128xi32>
    %c0_96 = arith.constant 0 : index
    %c4_97 = arith.constant 4 : index
    %c0_98 = arith.constant 0 : index
    %c0_99 = arith.constant 0 : index
    %100 = vector.load %arg2[%c0_96, %c4_97, %c0_98, %c0_99] : memref<2x8x2x128xi32, #tpu.memory_space<vmem>>, vector<2x1x2x128xi32>
    %101 = arith.subf %97, %98 : vector<8x1x2x128xf32>
    %102 = arith.mulf %101, %101 : vector<8x1x2x128xf32>
    %103 = vector.shape_cast %102 : vector<8x1x2x128xf32> to vector<1x8x1x2x128xf32>
    %cst_100 = arith.constant dense<0.000000e+00> : vector<1xf32>
    %104 = vector.multi_reduction <add>, %103, %cst_100 [1, 2, 3, 4] : vector<1x8x1x2x128xf32> to vector<1xf32>
    %105 = vector.shape_cast %104 : vector<1xf32> to vector<1x1x1x1x1xf32>
    %106 = vector.extract %105[0, 0, 0, 0, 0] : f32 from vector<1x1x1x1x1xf32>
    %107 = arith.cmpi eq, %99, %100 : vector<2x1x2x128xi32>
    %108 = arith.extui %107 : vector<2x1x2x128xi1> to vector<2x1x2x128xi32>
    %109 = arith.sitofp %108 : vector<2x1x2x128xi32> to vector<2x1x2x128xf32>
    %110 = vector.shape_cast %109 : vector<2x1x2x128xf32> to vector<1x2x1x2x128xf32>
    %cst_101 = arith.constant dense<0.000000e+00> : vector<1xf32>
    %111 = vector.multi_reduction <add>, %110, %cst_101 [1, 2, 3, 4] : vector<1x2x1x2x128xf32> to vector<1xf32>
    %112 = vector.shape_cast %111 : vector<1xf32> to vector<1x1x1x1x1xf32>
    %113 = vector.extract %112[0, 0, 0, 0, 0] : f32 from vector<1x1x1x1x1xf32>
    %114 = arith.mulf %106, %113 : f32
    %115 = arith.addf %96, %114 : f32
    %c0_102 = arith.constant 0 : index
    %c6 = arith.constant 6 : index
    %c0_103 = arith.constant 0 : index
    %c0_104 = arith.constant 0 : index
    %116 = vector.load %arg1[%c0_102, %c6, %c0_103, %c0_104] : memref<8x8x2x128xf32, #tpu.memory_space<vmem>>, vector<8x1x2x128xf32>
    %c0_105 = arith.constant 0 : index
    %c5_106 = arith.constant 5 : index
    %c0_107 = arith.constant 0 : index
    %c0_108 = arith.constant 0 : index
    %117 = vector.load %arg1[%c0_105, %c5_106, %c0_107, %c0_108] : memref<8x8x2x128xf32, #tpu.memory_space<vmem>>, vector<8x1x2x128xf32>
    %c0_109 = arith.constant 0 : index
    %c6_110 = arith.constant 6 : index
    %c0_111 = arith.constant 0 : index
    %c0_112 = arith.constant 0 : index
    %118 = vector.load %arg2[%c0_109, %c6_110, %c0_111, %c0_112] : memref<2x8x2x128xi32, #tpu.memory_space<vmem>>, vector<2x1x2x128xi32>
    %c0_113 = arith.constant 0 : index
    %c5_114 = arith.constant 5 : index
    %c0_115 = arith.constant 0 : index
    %c0_116 = arith.constant 0 : index
    %119 = vector.load %arg2[%c0_113, %c5_114, %c0_115, %c0_116] : memref<2x8x2x128xi32, #tpu.memory_space<vmem>>, vector<2x1x2x128xi32>
    %120 = arith.subf %116, %117 : vector<8x1x2x128xf32>
    %121 = arith.mulf %120, %120 : vector<8x1x2x128xf32>
    %122 = vector.shape_cast %121 : vector<8x1x2x128xf32> to vector<1x8x1x2x128xf32>
    %cst_117 = arith.constant dense<0.000000e+00> : vector<1xf32>
    %123 = vector.multi_reduction <add>, %122, %cst_117 [1, 2, 3, 4] : vector<1x8x1x2x128xf32> to vector<1xf32>
    %124 = vector.shape_cast %123 : vector<1xf32> to vector<1x1x1x1x1xf32>
    %125 = vector.extract %124[0, 0, 0, 0, 0] : f32 from vector<1x1x1x1x1xf32>
    %126 = arith.cmpi eq, %118, %119 : vector<2x1x2x128xi32>
    %127 = arith.extui %126 : vector<2x1x2x128xi1> to vector<2x1x2x128xi32>
    %128 = arith.sitofp %127 : vector<2x1x2x128xi32> to vector<2x1x2x128xf32>
    %129 = vector.shape_cast %128 : vector<2x1x2x128xf32> to vector<1x2x1x2x128xf32>
    %cst_118 = arith.constant dense<0.000000e+00> : vector<1xf32>
    %130 = vector.multi_reduction <add>, %129, %cst_118 [1, 2, 3, 4] : vector<1x2x1x2x128xf32> to vector<1xf32>
    %131 = vector.shape_cast %130 : vector<1xf32> to vector<1x1x1x1x1xf32>
    %132 = vector.extract %131[0, 0, 0, 0, 0] : f32 from vector<1x1x1x1x1xf32>
    %133 = arith.mulf %125, %132 : f32
    %134 = arith.addf %115, %133 : f32
    %c0_119 = arith.constant 0 : index
    %c7 = arith.constant 7 : index
    %c0_120 = arith.constant 0 : index
    %c0_121 = arith.constant 0 : index
    %135 = vector.load %arg1[%c0_119, %c7, %c0_120, %c0_121] : memref<8x8x2x128xf32, #tpu.memory_space<vmem>>, vector<8x1x2x128xf32>
    %c0_122 = arith.constant 0 : index
    %c6_123 = arith.constant 6 : index
    %c0_124 = arith.constant 0 : index
    %c0_125 = arith.constant 0 : index
    %136 = vector.load %arg1[%c0_122, %c6_123, %c0_124, %c0_125] : memref<8x8x2x128xf32, #tpu.memory_space<vmem>>, vector<8x1x2x128xf32>
    %c0_126 = arith.constant 0 : index
    %c7_127 = arith.constant 7 : index
    %c0_128 = arith.constant 0 : index
    %c0_129 = arith.constant 0 : index
    %137 = vector.load %arg2[%c0_126, %c7_127, %c0_128, %c0_129] : memref<2x8x2x128xi32, #tpu.memory_space<vmem>>, vector<2x1x2x128xi32>
    %c0_130 = arith.constant 0 : index
    %c6_131 = arith.constant 6 : index
    %c0_132 = arith.constant 0 : index
    %c0_133 = arith.constant 0 : index
    %138 = vector.load %arg2[%c0_130, %c6_131, %c0_132, %c0_133] : memref<2x8x2x128xi32, #tpu.memory_space<vmem>>, vector<2x1x2x128xi32>
    %139 = arith.subf %135, %136 : vector<8x1x2x128xf32>
    %140 = arith.mulf %139, %139 : vector<8x1x2x128xf32>
    %141 = vector.shape_cast %140 : vector<8x1x2x128xf32> to vector<1x8x1x2x128xf32>
    %cst_134 = arith.constant dense<0.000000e+00> : vector<1xf32>
    %142 = vector.multi_reduction <add>, %141, %cst_134 [1, 2, 3, 4] : vector<1x8x1x2x128xf32> to vector<1xf32>
    %143 = vector.shape_cast %142 : vector<1xf32> to vector<1x1x1x1x1xf32>
    %144 = vector.extract %143[0, 0, 0, 0, 0] : f32 from vector<1x1x1x1x1xf32>
    %145 = arith.cmpi eq, %137, %138 : vector<2x1x2x128xi32>
    %146 = arith.extui %145 : vector<2x1x2x128xi1> to vector<2x1x2x128xi32>
    %147 = arith.sitofp %146 : vector<2x1x2x128xi32> to vector<2x1x2x128xf32>
    %148 = vector.shape_cast %147 : vector<2x1x2x128xf32> to vector<1x2x1x2x128xf32>
    %cst_135 = arith.constant dense<0.000000e+00> : vector<1xf32>
    %149 = vector.multi_reduction <add>, %148, %cst_135 [1, 2, 3, 4] : vector<1x2x1x2x128xf32> to vector<1xf32>
    %150 = vector.shape_cast %149 : vector<1xf32> to vector<1x1x1x1x1xf32>
    %151 = vector.extract %150[0, 0, 0, 0, 0] : f32 from vector<1x1x1x1x1xf32>
    %152 = arith.mulf %144, %151 : f32
    %153 = arith.addf %134, %152 : f32
    %c0_136 = arith.constant 0 : index
    %c0_137 = arith.constant 0 : index
    %154 = memref.load %arg3[%c0_136, %c0_137] : memref<1x1xf32, #tpu.memory_space<smem>>
    %cst_138 = arith.constant 9.53674316E-7 : f32
    %155 = arith.mulf %153, %cst_138 : f32
    %156 = arith.addf %154, %155 : f32
    %c0_139 = arith.constant 0 : index
    %c0_140 = arith.constant 0 : index
    %157 = memref.load %arg3[%c0_139, %c0_140] : memref<1x1xf32, #tpu.memory_space<smem>>
    memref.store %156, %arg3[%c0_139, %c0_140] : memref<1x1xf32, #tpu.memory_space<smem>>
    %c0_141 = arith.constant 0 : index
    %c7_142 = arith.constant 7 : index
    %c0_143 = arith.constant 0 : index
    %c0_144 = arith.constant 0 : index
    %158 = vector.load %arg1[%c0_141, %c7_142, %c0_143, %c0_144] : memref<8x8x2x128xf32, #tpu.memory_space<vmem>>, vector<8x1x2x128xf32>
    %c0_145 = arith.constant 0 : index
    %c0_146 = arith.constant 0 : index
    %c0_147 = arith.constant 0 : index
    %c0_148 = arith.constant 0 : index
    %159 = vector.load %arg4[%c0_145, %c0_146, %c0_147, %c0_148] : memref<8x1x2x128xf32, #tpu.memory_space<vmem>>, vector<8x1x2x128xf32>
    tpu.vector_store %arg4[%c0_145, %c0_146, %c0_147, %c0_148], %158 {strides = array<i32>} : memref<8x1x2x128xf32, #tpu.memory_space<vmem>>, vector<8x1x2x128xf32>,
    %c0_149 = arith.constant 0 : index
    %c7_150 = arith.constant 7 : index
    %c0_151 = arith.constant 0 : index
    %c0_152 = arith.constant 0 : index
    %160 = vector.load %arg2[%c0_149, %c7_150, %c0_151, %c0_152] : memref<2x8x2x128xi32, #tpu.memory_space<vmem>>, vector<2x1x2x128xi32>
    %c0_153 = arith.constant 0 : index
    %c0_154 = arith.constant 0 : index
    %c0_155 = arith.constant 0 : index
    %c0_156 = arith.constant 0 : index
    %161 = vector.load %arg5[%c0_153, %c0_154, %c0_155, %c0_156] : memref<2x1x2x128xi32, #tpu.memory_space<vmem>>, vector<2x1x2x128xi32>
    tpu.vector_store %arg5[%c0_153, %c0_154, %c0_155, %c0_156], %160 {strides = array<i32>} : memref<2x1x2x128xi32, #tpu.memory_space<vmem>>, vector<2x1x2x128xi32>,
    return
  }
  func.func @transform_0(%arg0: i32) -> (i32, i32, i32, i32) {
    %c0_i32 = arith.constant 0 : i32
    %c0_i32_0 = arith.constant 0 : i32
    %c0_i32_1 = arith.constant 0 : i32
    %c0_i32_2 = arith.constant 0 : i32
    return %c0_i32, %arg0, %c0_i32_0, %c0_i32_1 : i32, i32, i32, i32
  }
  func.func @transform_1(%arg0: i32) -> (i32, i32, i32, i32) {
    %c0_i32 = arith.constant 0 : i32
    %c0_i32_0 = arith.constant 0 : i32
    %c0_i32_1 = arith.constant 0 : i32
    %c0_i32_2 = arith.constant 0 : i32
    return %c0_i32, %arg0, %c0_i32_0, %c0_i32_1 : i32, i32, i32, i32
  }
  func.func @transform_2(%arg0: i32) -> (i32, i32) {
    %c0_i32 = arith.constant 0 : i32
    %c0_i32_0 = arith.constant 0 : i32
    %c0_i32_1 = arith.constant 0 : i32
    return %c0_i32, %c0_i32_0 : i32, i32
  }
}

</mosaic_0001>

<bundles_post_ra>
// kernel: tpu_custom_call.1
= control target key start
LH: loop header
LB: loop body
LE: loop exit
PB: predicated region body
PF: predicated region fallthrough
CT: control target
= control target key end

     0   :  { %7 = vsyncpa [#allocation5], 0  ;;  %s1183_s0 = inlined_call_operand.hbm [shape: f32[8,8,2,128], index: 0, kind: input, shape index: {}]   ;;  %s1184_s1 = inlined_call_operand.hbm [shape: s32[2,8,2,128], index: 1, kind: input, shape index: {}]   ;;  %s1185_s2 = inlined_call_operand.hbm [shape: f32[1,1], index: 2, kind: output, shape index: {}]  }
   0x1   :  { %8 = vsyncpa [#allocation8], 0 }
   0x2   :  { %9 = vsyncpa [#allocation6], 0  ;;  %s805_s9 = smov [#allocation4]   ;;  %s745_s13 = scalar_lea.hbm %s1183_s0, 2048 }
   0x3   :  { %s15_s10 = sshll.u32 %s805_s9, 4  ;;  %p746_p0 = scmp.ne.s32.totalorder %s1183_s0, %s745_s13  ;;  %s16_s10 = int_to_ptr.vmem [resolvable:$true] %s15_s10 }
   0x4   :  { %p749_p1 = scmp.lt.u32.totalorder %s745_s13, %s1183_s0 }
   0x6   :  { %p751_p2 = pnand %p749_p1, %p746_p0 }
   0x8   :  { %754 = shalt.err (!%p751_p2)
}
   0x9   :  { %s755_s18 = scalar_lea.vmem %s16_s10, 2048  ;;  %p760_p4 = scmp.lt.s32.totalorder %s16_s10, %s16_s10 }
   0xa   :  { %p756_p3 = scmp.ne.s32.totalorder %s16_s10, %s755_s18  ;;  %p761_p5 = scmp.lt.s32.totalorder %s755_s18, %s755_s18 }
   0xc   :  { %p762_p6 = por %p761_p5, %p760_p4 }
   0xe   :  { %p763_p7 = pnand %p762_p6, %p756_p3 }
  0x10   :  { %766 = shalt.err (!%p763_p7)
}
  0x11   :  { %s806_s19 = smov 32   ;;  %s807_s20 = smov 2  }
  0x12   :  { %21 = dma.hbm_to_vmem [thread:$0]  %s1183_s0, 2048, %s16_s10, [#allocation5], %s806_s19, %s806_s19, %s807_s20  }
  0x13   :  { %s808_s23 = smov [#allocation7]   ;;  %s767_s27 = scalar_lea.hbm %s1184_s1, 512 }
  0x14   :  { %s27_s24 = sshll.u32 %s808_s23, 4  ;;  %p768_p8 = scmp.ne.s32.totalorder %s1184_s1, %s767_s27  ;;  %s28_s24 = int_to_ptr.vmem [resolvable:$true] %s27_s24 }
  0x15   :  { %p771_p9 = scmp.lt.u32.totalorder %s767_s27, %s1184_s1 }
  0x17   :  { %p773_p10 = pnand %p771_p9, %p768_p8 }
  0x19   :  { %776 = shalt.err (!%p773_p10)
}
  0x1a   :  { %s777_s4 = scalar_lea.vmem %s28_s24, 512  ;;  %p782_p12 = scmp.lt.s32.totalorder %s28_s24, %s28_s24 }
  0x1b   :  { %p778_p11 = scmp.ne.s32.totalorder %s28_s24, %s777_s4  ;;  %p783_p13 = scmp.lt.s32.totalorder %s777_s4, %s777_s4 }
  0x1d   :  { %p784_p0 = por %p783_p13, %p782_p12 }
  0x1f   :  { %p785_p1 = pnand %p784_p0, %p778_p11 }
  0x21   :  { %788 = shalt.err (!%p785_p1)
}
  0x22   :  { %33 = dma.hbm_to_vmem [thread:$0]  %s1184_s1, 512, %s28_s24, [#allocation8], %s806_s19, %s806_s19, %s807_s20  }
  0x23   :  { %799 = dma.done.wait [#allocation5], 2048  }
  0x24   :  { %800 = vsyncadd [#allocation5], 4294965248 }
  0x25   :  { %801 = dma.done.wait [#allocation8], 512  }
  0x26   :  { %802 = vsyncadd [#allocation8], 4294966784  ;;  %vm102_vm0 = vcmask 1041408   ;;  %v850_v0 = vld [vmem:[#allocation7] sm:$0x3]  ;;  %v809_v6 = vmov 0.0  }
  0x27   :  { %v852_v1 = vld [vmem:[#allocation7 + $0x10] sm:$0x3]  ;;  %v156_v2 = vld [vmem:[#allocation7 + $0x2] sm:$0x3]  ;;  %v157_v3 = vld [vmem:[#allocation7 + $0x12] sm:$0x3] }
  0x28   :  { %vm198_vm1 = vcmp.eq.s32.totalorder %v156_v2, %v850_v0  ;;  %v228_v4 = vld [vmem:[#allocation7 + $0x4] sm:$0x3]  ;;  %v229_v5 = vld [vmem:[#allocation7 + $0x14] sm:$0x3]  ;;  %vm199_vm2 = vcmp.eq.s32.totalorder %v157_v3, %v852_v1  ;;  %v62_v8 = vld [vmem:[#allocation7] sm:$0x3] }
  0x29   :  { %v692_v7 = vsel %vm198_vm1, 1.0, %v809_v6  ;;  %vm270_vm3 = vcmp.eq.s32.totalorder %v228_v4, %v156_v2  ;;  %vm271_vm4 = vcmp.eq.s32.totalorder %v229_v5, %v157_v3  ;;  %v63_v9 = vld [vmem:[#allocation7 + $0x10] sm:$0x3]  ;;  %v693_v10 = vsel %vm199_vm2, 1.0, %v809_v6  ;;  %64 = vst [vmem:[#allocation3] sm:$0x3] %v62_v8 }
  0x2a   :  { %v204_v11 = vsel %vm102_vm0, %v692_v7, 0.0  ;;  %v694_v12 = vsel %vm270_vm3, 1.0, %v809_v6  ;;  %v695_v13 = vsel %vm271_vm4, 1.0, %v809_v6  ;;  %65 = vst [vmem:[#allocation3 + $0x2] sm:$0x3] %v63_v9  ;;  %v205_v14 = vsel %vm102_vm0, %v693_v10, 0.0 }
  0x2b   :  { %v276_v15 = vsel %vm102_vm0, %v694_v12, 0.0  ;;  %v277_v16 = vsel %vm102_vm0, %v695_v13, 0.0  ;;  %v206_v17 = vadd.f32 %v205_v14, %v204_v11  ;;  %v864_v18 = vld [vmem:[#allocation7 + $0x6] sm:$0x3]  ;;  %v866_v19 = vld [vmem:[#allocation7 + $0x16] sm:$0x3] }
  0x2c   :  { %v868_v20 = vld [vmem:[#allocation4 + $0x2] sm:$0x3]  ;;  %v671_v21 = vld [vmem:[#allocation7 + $0xe] sm:$0x3]  ;;  %v672_v22 = vld [vmem:[#allocation7 + $0x1e] sm:$0x3]  ;;  %vm342_vm5 = vcmp.eq.s32.totalorder %v864_v18, %v228_v4  ;;  %vm343_vm6 = vcmp.eq.s32.totalorder %v866_v19, %v229_v5  ;;  %v278_v26 = vadd.f32 %v277_v16, %v276_v15 }
  0x2d   :  { %v872_v23 = vld [vmem:[#allocation4 + $0x12] sm:$0x3]  ;;  %v874_v24 = vld [vmem:[#allocation4 + $0x22] sm:$0x3]  ;;  %207 = vadd.xlane.f32.xlu1 %v206_v17  ;;  %v696_v27 = vsel %vm342_vm5, 1.0, %v809_v6  ;;  %v697_v28 = vsel %vm343_vm6, 1.0, %v809_v6 }
  0x2e   :  { %v876_v25 = vld [vmem:[#allocation4 + $0x32] sm:$0x3]  ;;  %v880_v29 = vld [vmem:[#allocation4 + $0x42] sm:$0x3]  ;;  %v348_v31 = vsel %vm102_vm0, %v696_v27, 0.0  ;;  %v349_v32 = vsel %vm102_vm0, %v697_v28, 0.0 }
  0x2f   :  { %v882_v30 = vld [vmem:[#allocation4 + $0x52] sm:$0x3]  ;;  %v886_v33 = vld [vmem:[#allocation4 + $0x62] sm:$0x3]  ;;  %v890_v35 = vld [vmem:[#allocation4 + $0x4] sm:$0x3]  ;;  %v350_v44 = vadd.f32 %v349_v32, %v348_v31 }
  0x30   :  { %v888_v34 = vld [vmem:[#allocation4 + $0x72] sm:$0x3]  ;;  %v892_v36 = vld [vmem:[#allocation4 + $0x14] sm:$0x3]  ;;  %v894_v37 = vld [vmem:[#allocation4 + $0x24] sm:$0x3]  ;;  %v230_v41 = vsub.f32 %v890_v35, %v868_v20 }
  0x31   :  { %v84_v38 = vld [vmem:[#allocation3] sm:$0x3]  ;;  %v85_v39 = vld [vmem:[#allocation3 + $0x2] sm:$0x3]  ;;  %v896_v40 = vld [vmem:[#allocation4 + $0x34] sm:$0x3]  ;;  %v231_v42 = vsub.f32 %v892_v36, %v872_v23  ;;  %v232_v43 = vsub.f32 %v894_v37, %v874_v24  ;;  %279 = vadd.xlane.f32.xlu1 %v278_v26 }
  0x32   :  { %vm127_vm7 = vcmp.eq.s32.totalorder %v850_v0, %v84_v38  ;;  %vm128_vm8 = vcmp.eq.s32.totalorder %v852_v1, %v85_v39  ;;  %673 = vst [vmem:[#allocation3] sm:$0x3] %v671_v21  ;;  %674 = vst [vmem:[#allocation3 + $0x2] sm:$0x3] %v672_v22  ;;  %v223_v45 = vld [vmem:[#allocation4 + $0x44] sm:$0x3]  ;;  %v233_v48 = vsub.f32 %v896_v40, %v876_v25 }
  0x33   :  { %v224_v46 = vld [vmem:[#allocation4 + $0x54] sm:$0x3]  ;;  %v225_v47 = vld [vmem:[#allocation4 + $0x64] sm:$0x3]  ;;  %v690_v49 = vsel %vm127_vm7, 1.0, %v809_v6  ;;  %v691_v50 = vsel %vm128_vm8, 1.0, %v809_v6  ;;  %v234_v52 = vsub.f32 %v223_v45, %v880_v29  ;;  %v238_v59 = vmul.f32 %v230_v41, %v230_v41 }
  0x34   :  { %v226_v51 = vld [vmem:[#allocation4 + $0x74] sm:$0x3]  ;;  %v235_v53 = vsub.f32 %v224_v46, %v882_v30  ;;  %v133_v54 = vsel %vm102_vm0, %v690_v49, 0.0  ;;  %v134_v55 = vsel %vm102_vm0, %v691_v50, 0.0  ;;  %v236_v56 = vsub.f32 %v225_v47, %v886_v33  ;;  %v916_v62 = vld [vmem:[#allocation7 + $0x8] sm:$0x3] }
  0x35   :  { %v237_v57 = vsub.f32 %v226_v51, %v888_v34  ;;  %v135_v58 = vadd.f32 %v134_v55, %v133_v54  ;;  %v239_v60 = vmul.f32 %v231_v42, %v231_v42  ;;  %v240_v61 = vmul.f32 %v232_v43, %v232_v43  ;;  %351 = vadd.xlane.f32.xlu1 %v350_v44  ;;  %v918_v3 = vld [vmem:[#allocation7 + $0x18] sm:$0x3]  ;;  %v920_v4 = vld [vmem:[#allocation4 + $0x6] sm:$0x3]  ;;  %v922_v5 = vld [vmem:[#allocation4 + $0x16] sm:$0x3] }
  0x36   :  { %v241_v63 = vmul.f32 %v233_v48, %v233_v48  ;;  %v242_v0 = vmul.f32 %v234_v52, %v234_v52  ;;  %v243_v1 = vmul.f32 %v235_v53, %v235_v53  ;;  %v244_v2 = vmul.f32 %v236_v56, %v236_v56  ;;  %v927_v11 = vld [vmem:[#allocation4 + $0x26] sm:$0x3]  ;;  %v932_v16 = vld [vmem:[#allocation4 + $0x36] sm:$0x3]  ;;  %v966_v54 = vld [vmem:[#allocation4] sm:$0x3] }
  0x37   :  { %136 = vadd.xlane.f32.xlu0 %v135_v58  ;;  %v245_v7 = vmul.f32 %v237_v57, %v237_v57  ;;  %v246_v8 = vsel %vm102_vm0, %v238_v59, 0.0  ;;  %v247_v9 = vsel %vm102_vm0, %v239_v60, 0.0  ;;  %v249_v10 = vsel %vm102_vm0, %v240_v61, 0.0  ;;  %v942_v22 = vld [vmem:[#allocation4 + $0x46] sm:$0x3] }
  0x38   :  { %v248_v12 = vadd.f32 %v247_v9, %v246_v8  ;;  %v251_v13 = vsel %vm102_vm0, %v241_v63, 0.0  ;;  %v253_v14 = vsel %vm102_vm0, %v242_v0, 0.0  ;;  %v255_v15 = vsel %vm102_vm0, %v243_v1, 0.0  ;;  %v944_v26 = vld [vmem:[#allocation4 + $0x56] sm:$0x3] }
  0x39   :  { %v257_v17 = vsel %vm102_vm0, %v244_v2, 0.0  ;;  %v936_v21 = vsel %vm102_vm0, %v245_v7, 0.0  ;;  %vm414_vm9 = vcmp.eq.s32.totalorder %v916_v62, %v864_v18  ;;  %vm415_vm10 = vcmp.eq.s32.totalorder %v918_v3, %v866_v19  ;;  %v948_v32 = vld [vmem:[#allocation4 + $0x66] sm:$0x3]  ;;  %v950_v38 = vld [vmem:[#allocation4 + $0x76] sm:$0x3] }
  0x3a   :  { %v250_v27 = vadd.f32 %v249_v10, %v248_v12  ;;  %v698_v28 = vsel %vm414_vm9, 1.0, %v809_v6  ;;  %v699_v31 = vsel %vm415_vm10, 1.0, %v809_v6  ;;  %v302_v39 = vsub.f32 %v920_v4, %v890_v35  ;;  %v968_v57 = vld [vmem:[#allocation4 + $0x10] sm:$0x3]  ;;  %v970_v58 = vld [vmem:[#allocation4 + $0x20] sm:$0x3] }
  0x3b   :  { %v420_v18 = vsel %vm102_vm0, %v698_v28, 0.0  ;;  %v421_v19 = vsel %vm102_vm0, %v699_v31, 0.0  ;;  %v303_v41 = vsub.f32 %v922_v5, %v892_v36  ;;  %v304_v42 = vsub.f32 %v927_v11, %v894_v37  ;;  %v978_v60 = vld [vmem:[#allocation4 + $0x60] sm:$0x3]  ;;  %v47_v7 = vld [vmem:[#allocation4 + $0x10] sm:$0x3] }
  0x3c   :  { %v252_v43 = vadd.f32 %v251_v13, %v250_v27  ;;  %v422_v44 = vadd.f32 %v421_v19, %v420_v18  ;;  %v305_v48 = vsub.f32 %v932_v16, %v896_v40  ;;  %v306_v49 = vsub.f32 %v942_v22, %v223_v45  ;;  %v972_v40 = vld [vmem:[#allocation4 + $0x30] sm:$0x3]  ;;  %v46_v61 = vld [vmem:[#allocation4] sm:$0x3]  ;;  %55 = vst [vmem:[#allocation2 + $0x2] sm:$0x3] %v47_v7 }
  0x3d   :  { %v307_v50 = vsub.f32 %v944_v26, %v224_v46  ;;  %v308_v35 = vsub.f32 %v948_v32, %v225_v47  ;;  %v309_v52 = vsub.f32 %v950_v38, %v226_v51  ;;  %v310_v53 = vmul.f32 %v302_v39, %v302_v39  ;;  %v974_v47 = vld [vmem:[#allocation4 + $0x40] sm:$0x3]  ;;  %v976_v51 = vld [vmem:[#allocation4 + $0x50] sm:$0x3]  ;;  %54 = vst [vmem:[#allocation2] sm:$0x3] %v46_v61 }
  0x3e   :  { %v254_v36 = vadd.f32 %v253_v14, %v252_v43  ;;  %423 = vadd.xlane.f32.xlu1 %v422_v44  ;;  %v311_v55 = vmul.f32 %v303_v41, %v303_v41  ;;  %v312_v37 = vmul.f32 %v304_v42, %v304_v42  ;;  %v313_v56 = vmul.f32 %v305_v48, %v305_v48  ;;  %v985_v13 = vld [vmem:[#allocation4 + $0x70] sm:$0x3]  ;;  %v48_v14 = vld [vmem:[#allocation4 + $0x20] sm:$0x3]  ;;  %v659_v61 = vld [vmem:[#allocation4 + $0x4e] sm:$0x3] }
  0x3f   :  { %v314_v45 = vmul.f32 %v306_v49, %v306_v49  ;;  %v315_v46 = vmul.f32 %v307_v50, %v307_v50  ;;  %v316_v59 = vmul.f32 %v308_v35, %v308_v35  ;;  %v318_v0 = vsel %vm102_vm0, %v310_v53, 0.0  ;;  %v49_v39 = vld [vmem:[#allocation4 + $0x30] sm:$0x3]  ;;  %v50_v18 = vld [vmem:[#allocation4 + $0x40] sm:$0x3] }
  0x40   :  { %v256_v63 = vadd.f32 %v255_v15, %v254_v36  ;;  %v319_v1 = vsel %vm102_vm0, %v311_v55, 0.0  ;;  %v321_v2 = vsel %vm102_vm0, %v312_v37, 0.0  ;;  %v317_v8 = vmul.f32 %v309_v52, %v309_v52  ;;  %56 = vst [vmem:[#allocation2 + $0x4] sm:$0x3] %v48_v14  ;;  %v51_v43 = vld [vmem:[#allocation4 + $0x50] sm:$0x3] }
  0x41   :  { %v320_v9 = vadd.f32 %v319_v1, %v318_v0  ;;  %v323_v10 = vsel %vm102_vm0, %v313_v56, 0.0  ;;  %v325_v12 = vsel %vm102_vm0, %v314_v45, 0.0  ;;  %v327_v15 = vsel %vm102_vm0, %v315_v46, 0.0  ;;  %v52_v44 = vld [vmem:[#allocation4 + $0x60] sm:$0x3] }
  0x42   :  { %v258_v27 = vadd.f32 %v257_v17, %v256_v63  ;;  %v989_v28 = vsel %vm102_vm0, %v316_v59, 0.0  ;;  %v158_v31 = vsub.f32 %v868_v20, %v966_v54  ;;  %v159_v41 = vsub.f32 %v872_v23, %v968_v57  ;;  %v53_v48 = vld [vmem:[#allocation4 + $0x70] sm:$0x3]  ;;  %57 = vst [vmem:[#allocation2 + $0x6] sm:$0x3] %v49_v39 }
  0x43   :  { %v322_v19 = vadd.f32 %v321_v2, %v320_v9  ;;  %v160_v42 = vsub.f32 %v874_v24, %v970_v58  ;;  %v161_v17 = vsub.f32 %v876_v25, %v972_v40  ;;  %58 = vst [vmem:[#allocation2 + $0x8] sm:$0x3] %v50_v18  ;;  %v162_v49 = vsub.f32 %v880_v29, %v974_v47  ;;  %v1008_v53 = vld [vmem:[#allocation4 + $0x8] sm:$0x3]  ;;  %v655_v36 = vld [vmem:[#allocation4 + $0xe] sm:$0x3] }
  0x44   :  { %v260_v20 = vadd.f32 %v936_v21, %v258_v27  ;;  %v163_v50 = vsub.f32 %v882_v30, %v976_v51  ;;  %v164_v23 = vsub.f32 %v886_v33, %v978_v60  ;;  %59 = vst [vmem:[#allocation2 + $0xa] sm:$0x3] %v51_v43  ;;  %60 = vst [vmem:[#allocation2 + $0xc] sm:$0x3] %v52_v44  ;;  %v1010_v21 = vld [vmem:[#allocation4 + $0x18] sm:$0x3] }
  0x45   :  { %61 = vst [vmem:[#allocation2 + $0xe] sm:$0x3] %v53_v48  ;;  %v324_v24 = vadd.f32 %v323_v10, %v322_v19  ;;  %v165_v25 = vsub.f32 %v888_v34, %v985_v13  ;;  %v166_v35 = vmul.f32 %v158_v31, %v158_v31  ;;  %v167_v52 = vmul.f32 %v159_v41, %v159_v41  ;;  %v1012_v29 = vld [vmem:[#allocation4 + $0x28] sm:$0x3]  ;;  %v656_v30 = vld [vmem:[#allocation4 + $0x1e] sm:$0x3] }
  0x46   :  { %261 = vadd.xlane.f32.xlu0 %v260_v20  ;;  %v168_v55 = vmul.f32 %v160_v42, %v160_v42  ;;  %v169_v33 = vmul.f32 %v161_v17, %v161_v17  ;;  %v170_v37 = vmul.f32 %v162_v49, %v162_v49  ;;  %v171_v56 = vmul.f32 %v163_v50, %v163_v50  ;;  %v1014_v45 = vld [vmem:[#allocation4 + $0x38] sm:$0x3]  ;;  %v1016_v46 = vld [vmem:[#allocation4 + $0x48] sm:$0x3]  ;;  %v657_v34 = vld [vmem:[#allocation4 + $0x2e] sm:$0x3] }
  0x47   :  { %v658_v59 = vld [vmem:[#allocation4 + $0x3e] sm:$0x3]  ;;  %v326_v63 = vadd.f32 %v325_v12, %v324_v24  ;;  %v331_v0 = vsel %vm102_vm0, %v317_v8, 0.0  ;;  %v172_v1 = vmul.f32 %v164_v23, %v164_v23  ;;  %v174_v2 = vsel %vm102_vm0, %v166_v35, 0.0  ;;  %v1020_v7 = vld [vmem:[#allocation4 + $0x58] sm:$0x3] }
  0x48   :  { %v1022_v9 = vld [vmem:[#allocation4 + $0x68] sm:$0x3]  ;;  %v1024_v10 = vld [vmem:[#allocation4 + $0x78] sm:$0x3]  ;;  %v1026_v14 = vld [vmem:[#allocation2] sm:$0x3]  ;;  %v173_v39 = vmul.f32 %v165_v25, %v165_v25  ;;  %v374_v49 = vsub.f32 %v1008_v53, %v920_v4  ;;  %v375_v50 = vsub.f32 %v1010_v21, %v922_v5  ;;  %v376_v23 = vsub.f32 %v1012_v29, %v927_v11 }
  0x49   :  { %v660_v27 = vld [vmem:[#allocation4 + $0x5e] sm:$0x3]  ;;  %v661_v31 = vld [vmem:[#allocation4 + $0x6e] sm:$0x3]  ;;  %v175_v18 = vsel %vm102_vm0, %v167_v52, 0.0  ;;  %v177_v12 = vsel %vm102_vm0, %v168_v55, 0.0  ;;  %v328_v41 = vadd.f32 %v327_v15, %v326_v63  ;;  %v377_v52 = vsub.f32 %v1014_v45, %v932_v16 }
  0x4a   :  { %v179_v8 = vsel %vm102_vm0, %v169_v33, 0.0  ;;  %v75_v19 = vld [vmem:[#allocation2 + $0x2] sm:$0x3]  ;;  %663 = vst [vmem:[#allocation2] sm:$0x3] %v655_v36  ;;  %v176_v42 = vadd.f32 %v175_v18, %v174_v2  ;;  %v181_v17 = vsel %vm102_vm0, %v170_v37, 0.0  ;;  %v378_v36 = vsub.f32 %v1016_v46, %v942_v22 }
  0x4b   :  { %v183_v43 = vsel %vm102_vm0, %v171_v56, 0.0  ;;  %v76_v44 = vld [vmem:[#allocation2 + $0x4] sm:$0x3]  ;;  %v662_v48 = vld [vmem:[#allocation4 + $0x7e] sm:$0x3]  ;;  %v185_v20 = vsel %vm102_vm0, %v172_v1, 0.0  ;;  %v330_v25 = vadd.f32 %v989_v28, %v328_v41  ;;  %v379_v5 = vsub.f32 %v1020_v7, %v944_v26 }
  0x4c   :  { %664 = vst [vmem:[#allocation2 + $0x2] sm:$0x3] %v656_v30  ;;  %v77_v15 = vld [vmem:[#allocation2 + $0x6] sm:$0x3]  ;;  %v78_v24 = vld [vmem:[#allocation2 + $0x8] sm:$0x3]  ;;  %v178_v35 = vadd.f32 %v177_v12, %v176_v42  ;;  %v380_v11 = vsub.f32 %v1022_v9, %v948_v32  ;;  %v381_v28 = vsub.f32 %v1024_v10, %v950_v38  ;;  %v382_v33 = vmul.f32 %v374_v49, %v374_v49 }
  0x4d   :  { %665 = vst [vmem:[#allocation2 + $0x4] sm:$0x3] %v657_v34  ;;  %v79_v30 = vld [vmem:[#allocation2 + $0xa] sm:$0x3]  ;;  %v80_v4 = vld [vmem:[#allocation2 + $0xc] sm:$0x3]  ;;  %v332_v16 = vadd.f32 %v331_v0, %v330_v25  ;;  %v383_v37 = vmul.f32 %v375_v50, %v375_v50  ;;  %v384_v56 = vmul.f32 %v376_v23, %v376_v23  ;;  %v385_v34 = vmul.f32 %v377_v52, %v377_v52 }
  0x4e   :  { %v81_v55 = vld [vmem:[#allocation2 + $0xe] sm:$0x3]  ;;  %666 = vst [vmem:[#allocation2 + $0x6] sm:$0x3] %v658_v59  ;;  %667 = vst [vmem:[#allocation2 + $0x8] sm:$0x3] %v659_v61  ;;  %v180_v22 = vadd.f32 %v179_v8, %v178_v35  ;;  %v386_v59 = vmul.f32 %v378_v36, %v378_v36  ;;  %v387_v61 = vmul.f32 %v379_v5, %v379_v5 }
  0x4f   :  { %668 = vst [vmem:[#allocation2 + $0xa] sm:$0x3] %v660_v27  ;;  %669 = vst [vmem:[#allocation2 + $0xc] sm:$0x3] %v661_v31  ;;  %v388_v63 = vmul.f32 %v380_v11, %v380_v11  ;;  %v1051_v1 = vld [vmem:[#allocation7 + $0xa] sm:$0x3]  ;;  %333 = vadd.xlane.f32.xlu0 %v332_v16  ;;  %v389_v0 = vmul.f32 %v381_v28, %v381_v28  ;;  %v87_v23 = vsub.f32 %v968_v57, %v75_v19 }
  0x50   :  { %670 = vst [vmem:[#allocation2 + $0xe] sm:$0x3] %v662_v48  ;;  %v182_v26 = vadd.f32 %v181_v17, %v180_v22  ;;  %v187_v32 = vsel %vm102_vm0, %v173_v39, 0.0  ;;  %v390_v38 = vsel %vm102_vm0, %v382_v33, 0.0  ;;  %v391_v2 = vsel %vm102_vm0, %v383_v37, 0.0 }
  0x51   :  { %v1056_v27 = vld [vmem:[#allocation7 + $0x1a] sm:$0x3]  ;;  %v392_v31 = vadd.f32 %v391_v2, %v390_v38  ;;  %v393_v18 = vsel %vm102_vm0, %v384_v56, 0.0  ;;  %v395_v12 = vsel %vm102_vm0, %v385_v34, 0.0  ;;  %v397_v41 = vsel %vm102_vm0, %v386_v59, 0.0 }
  0x52   :  { %v184_v8 = vadd.f32 %v183_v43, %v182_v26  ;;  %v399_v42 = vsel %vm102_vm0, %v387_v61, 0.0  ;;  %v401_v17 = vsel %vm102_vm0, %v388_v63, 0.0  ;;  %vm486_vm11 = vcmp.eq.s32.totalorder %v1051_v1, %v916_v62  ;;  %v1080_v37 = vld [vmem:[#allocation7 + $0xc] sm:$0x3]  ;;  %v1090_v56 = vld [vmem:[#allocation4 + $0x1a] sm:$0x3] }
  0x53   :  { %v394_v39 = vadd.f32 %v393_v18, %v392_v31  ;;  %vm487_vm12 = vcmp.eq.s32.totalorder %v1056_v27, %v918_v3  ;;  %v86_v48 = vsub.f32 %v966_v54, %v1026_v14  ;;  %v700_v50 = vsel %vm486_vm11, 1.0, %v809_v6  ;;  %v1092_v34 = vld [vmem:[#allocation4 + $0x2a] sm:$0x3]  ;;  %v1094_v59 = vld [vmem:[#allocation4 + $0x3a] sm:$0x3] }
  0x54   :  { %v186_v49 = vadd.f32 %v185_v20, %v184_v8  ;;  %v701_v43 = vsel %vm487_vm12, 1.0, %v809_v6  ;;  %v492_v35 = vsel %vm102_vm0, %v700_v50, 0.0  ;;  %v88_v62 = vsub.f32 %v970_v58, %v76_v44  ;;  %v1106_v31 = vld [vmem:[#allocation4 + $0x5a] sm:$0x3]  ;;  %v1108_v18 = vld [vmem:[#allocation4 + $0x6a] sm:$0x3] }
  0x55   :  { %v396_v25 = vadd.f32 %v395_v12, %v394_v39  ;;  %v493_v52 = vsel %vm102_vm0, %v701_v43, 0.0  ;;  %v89_v3 = vsub.f32 %v972_v40, %v77_v15  ;;  %v90_v54 = vsub.f32 %v974_v47, %v78_v24  ;;  %v1082_v40 = vld [vmem:[#allocation7 + $0x1c] sm:$0x3]  ;;  %v1088_v15 = vld [vmem:[#allocation4 + $0xa] sm:$0x3] }
  0x56   :  { %v188_v36 = vadd.f32 %v187_v32, %v186_v49  ;;  %v494_v5 = vadd.f32 %v493_v52, %v492_v35  ;;  %v91_v20 = vsub.f32 %v976_v51, %v79_v30  ;;  %v92_v11 = vsub.f32 %v978_v60, %v80_v4  ;;  %v1101_v32 = vld [vmem:[#allocation4 + $0x4a] sm:$0x3] }
  0x57   :  { %v398_v14 = vadd.f32 %v397_v41, %v396_v25  ;;  %v93_v57 = vsub.f32 %v985_v13, %v81_v55  ;;  %v94_v19 = vmul.f32 %v86_v48, %v86_v48  ;;  %v95_v28 = vmul.f32 %v87_v23, %v87_v23  ;;  %v1112_v41 = vld [vmem:[#allocation4 + $0x7a] sm:$0x3] }
  0x58   :  { %189 = vadd.xlane.f32.xlu1 %v188_v36  ;;  %v96_v33 = vmul.f32 %v88_v62, %v88_v62  ;;  %v97_v16 = vmul.f32 %v89_v3, %v89_v3  ;;  %v98_v58 = vmul.f32 %v90_v54, %v90_v54  ;;  %v99_v44 = vmul.f32 %v91_v20, %v91_v20  ;;  %v588_v36 = vld [vmem:[#allocation7 + $0xe] sm:$0x3]  ;;  %v589_v3 = vld [vmem:[#allocation7 + $0x1e] sm:$0x3] }
  0x59   :  { %v400_v22 = vadd.f32 %v399_v42, %v398_v14  ;;  %v403_v47 = vsel %vm102_vm0, %v389_v0, 0.0  ;;  %v103_v51 = vsel %vm102_vm0, %v94_v19, 0.0  ;;  %v104_v60 = vsel %vm102_vm0, %v95_v28, 0.0 }
  0x5a   :  { %v106_v13 = vsel %vm102_vm0, %v96_v33, 0.0  ;;  %v100_v30 = vmul.f32 %v92_v11, %v92_v11  ;;  %v101_v4 = vmul.f32 %v93_v57, %v93_v57  ;;  %v105_v55 = vadd.f32 %v104_v60, %v103_v51  ;;  %v508_v33 = vld [vmem:[#allocation4 + $0x1c] sm:$0x3] }
  0x5b   :  { %v402_v24 = vadd.f32 %v401_v17, %v400_v22  ;;  %v108_v61 = vsel %vm102_vm0, %v97_v16, 0.0  ;;  %v110_v63 = vsel %vm102_vm0, %v98_v58, 0.0  ;;  %v112_v26 = vsel %vm102_vm0, %v99_v44, 0.0  ;;  %v509_v16 = vld [vmem:[#allocation4 + $0x2c] sm:$0x3] }
  0x5c   :  { %495 = vadd.xlane.f32.xlu1 %v494_v5  ;;  %vm558_vm13 = vcmp.eq.s32.totalorder %v1080_v37, %v1051_v1  ;;  %v107_v2 = vadd.f32 %v106_v13, %v105_v55  ;;  %vm559_vm14 = vcmp.eq.s32.totalorder %v1082_v40, %v1056_v27  ;;  %v446_v1 = vsub.f32 %v1088_v15, %v1008_v53  ;;  %v510_v58 = vld [vmem:[#allocation4 + $0x3c] sm:$0x3]  ;;  %v511_v44 = vld [vmem:[#allocation4 + $0x4c] sm:$0x3] }
  0x5d   :  { %v404_v38 = vadd.f32 %v403_v47, %v402_v24  ;;  %v702_v0 = vsel %vm558_vm13, 1.0, %v809_v6  ;;  %v703_v12 = vsel %vm559_vm14, 1.0, %v809_v6  ;;  %v447_v42 = vsub.f32 %v1090_v56, %v1010_v21 }
  0x5e   :  { %v564_v8 = vsel %vm102_vm0, %v702_v0, 0.0  ;;  %v109_v27 = vadd.f32 %v108_v61, %v107_v2  ;;  %v565_v17 = vsel %vm102_vm0, %v703_v12, 0.0  ;;  %v448_v39 = vsub.f32 %v1092_v34, %v1012_v29 }
  0x5f   :  { %405 = vadd.xlane.f32.xlu0 %v404_v38  ;;  %v449_v48 = vsub.f32 %v1094_v59, %v1014_v45  ;;  %v566_v49 = vadd.f32 %v565_v17, %v564_v8  ;;  %v450_v50 = vsub.f32 %v1101_v32, %v1016_v46  ;;  %v451_v53 = vsub.f32 %v1106_v31, %v1020_v7 }
  0x60   :  { %v452_v21 = vsub.f32 %v1108_v18, %v1022_v9  ;;  %v111_v43 = vadd.f32 %v110_v63, %v109_v27  ;;  %v453_v23 = vsub.f32 %v1112_v41, %v1024_v10  ;;  %v454_v25 = vmul.f32 %v446_v1, %v446_v1  ;;  %v507_v9 = vld [vmem:[#allocation4 + $0xc] sm:$0x3]  ;;  %v514_v1 = vld [vmem:[#allocation4 + $0x7c] sm:$0x3]  ;;  %v579_v27 = vld [vmem:[#allocation4 + $0xe] sm:$0x3] }
  0x61   :  { %v455_v35 = vmul.f32 %v447_v42, %v447_v42  ;;  %v114_v29 = vsel %vm102_vm0, %v100_v30, 0.0  ;;  %567 = vadd.xlane.f32.xlu1 %v566_v49  ;;  %v456_v45 = vmul.f32 %v448_v39, %v448_v39  ;;  %v457_v52 = vmul.f32 %v449_v48, %v449_v48  ;;  %v512_v30 = vld [vmem:[#allocation4 + $0x5c] sm:$0x3]  ;;  %v581_v48 = vld [vmem:[#allocation4 + $0x2e] sm:$0x3] }
  0x62   :  { %v458_v62 = vmul.f32 %v450_v50, %v450_v50  ;;  %v113_v46 = vadd.f32 %v112_v26, %v111_v43  ;;  %v116_v5 = vsel %vm102_vm0, %v101_v4, 0.0  ;;  %v462_v7 = vsel %vm102_vm0, %v454_v25, 0.0  ;;  %v513_v4 = vld [vmem:[#allocation4 + $0x6c] sm:$0x3]  ;;  %v582_v50 = vld [vmem:[#allocation4 + $0x3e] sm:$0x3] }
  0x63   :  { %v459_v54 = vmul.f32 %v451_v53, %v451_v53  ;;  %v460_v14 = vmul.f32 %v452_v21, %v452_v21  ;;  %v463_v10 = vsel %vm102_vm0, %v455_v35, 0.0  ;;  %v465_v20 = vsel %vm102_vm0, %v456_v45, 0.0  ;;  %v583_v25 = vld [vmem:[#allocation4 + $0x4e] sm:$0x3] }
  0x64   :  { %v115_v11 = vadd.f32 %v114_v29, %v113_v46  ;;  %v461_v57 = vmul.f32 %v453_v23, %v453_v23  ;;  %v464_v19 = vadd.f32 %v463_v10, %v462_v7  ;;  %v467_v28 = vsel %vm102_vm0, %v457_v52, 0.0 }
  0x65   :  { %v469_v22 = vsel %vm102_vm0, %v458_v62, 0.0  ;;  %vm630_vm15 = vcmp.eq.s32.totalorder %v588_v36, %v1080_v37  ;;  %vm631_vm1 = vcmp.eq.s32.totalorder %v589_v3, %v1082_v40  ;;  %v518_v47 = vsub.f32 %v507_v9, %v1088_v15  ;;  %v584_v36 = vld [vmem:[#allocation4 + $0x5e] sm:$0x3] }
  0x66   :  { %v117_v51 = vadd.f32 %v116_v5, %v115_v11  ;;  %v466_v60 = vadd.f32 %v465_v20, %v464_v19  ;;  %v704_v13 = vsel %vm630_vm15, 1.0, %v809_v6  ;;  %v705_v24 = vsel %vm631_vm1, 1.0, %v809_v6 }
  0x67   :  { %v636_v55 = vsel %vm102_vm0, %v704_v13, 0.0  ;;  %v637_v61 = vsel %vm102_vm0, %v705_v24, 0.0  ;;  %v519_v37 = vsub.f32 %v508_v33, %v1090_v56  ;;  %v520_v40 = vsub.f32 %v509_v16, %v1092_v34 }
  0x68   :  { %118 = vadd.xlane.f32.xlu0 %v117_v51  ;;  %v468_v63 = vadd.f32 %v467_v28, %v466_v60  ;;  %v638_v26 = vadd.f32 %v637_v61, %v636_v55  ;;  %v521_v15 = vsub.f32 %v510_v58, %v1094_v59  ;;  %v522_v38 = vsub.f32 %v511_v44, %v1101_v32  ;;  %v580_v59 = vld [vmem:[#allocation4 + $0x1e] sm:$0x3] }
  0x69   :  { %v471_v2 = vsel %vm102_vm0, %v459_v54, 0.0  ;;  %v523_v6 = vsub.f32 %v512_v30, %v1106_v31  ;;  %v524_v0 = vsub.f32 %v513_v4, %v1108_v18  ;;  %v526_v12 = vmul.f32 %v518_v47, %v518_v47 }
  0x6a   :  { %v470_v8 = vadd.f32 %v469_v22, %v468_v63  ;;  %639 = vadd.xlane.f32.xlu1 %v638_v26  ;;  %v527_v56 = vmul.f32 %v519_v37, %v519_v37  ;;  %v528_v42 = vmul.f32 %v520_v40, %v520_v40  ;;  %v529_v34 = vmul.f32 %v521_v15, %v521_v15 }
  0x6b   :  { %v473_v17 = vsel %vm102_vm0, %v460_v14, 0.0  ;;  %v530_v39 = vmul.f32 %v522_v38, %v522_v38  ;;  %v534_v49 = vsel %vm102_vm0, %v526_v12, 0.0  ;;  %v475_v53 = vsel %vm102_vm0, %v461_v57, 0.0 }
  0x6c   :  { %v472_v32 = vadd.f32 %v471_v2, %v470_v8  ;;  %v535_v31 = vsel %vm102_vm0, %v527_v56, 0.0  ;;  %v537_v18 = vsel %vm102_vm0, %v528_v42, 0.0  ;;  %v525_v21 = vsub.f32 %v514_v1, %v1112_v41  ;;  %v585_v41 = vld [vmem:[#allocation4 + $0x6e] sm:$0x3] }
  0x6d   :  { %v531_v43 = vmul.f32 %v523_v6, %v523_v6  ;;  %v536_v23 = vadd.f32 %v535_v31, %v534_v49  ;;  %v532_v29 = vmul.f32 %v524_v0, %v524_v0  ;;  %v539_v45 = vsel %vm102_vm0, %v529_v34, 0.0 }
  0x6e   :  { %v474_v35 = vadd.f32 %v473_v17, %v472_v32  ;;  %v590_v52 = vsub.f32 %v579_v27, %v507_v9  ;;  %v591_v46 = vsub.f32 %v580_v59, %v508_v33  ;;  %v592_v5 = vsub.f32 %v581_v48, %v509_v16  ;;  %v586_v16 = vld [vmem:[#allocation4 + $0x7e] sm:$0x3] }
  0x6f   :  { %v538_v62 = vadd.f32 %v537_v18, %v536_v23  ;;  %v593_v7 = vsub.f32 %v582_v50, %v510_v58  ;;  %v541_v54 = vsel %vm102_vm0, %v530_v39, 0.0  ;;  %v594_v14 = vsub.f32 %v583_v25, %v511_v44 }
  0x70   :  { %v476_v3 = vadd.f32 %v475_v53, %v474_v35  ;;  %v533_v10 = vmul.f32 %v525_v21, %v525_v21  ;;  %v598_v11 = vmul.f32 %v590_v52, %v590_v52  ;;  %v599_v57 = vmul.f32 %v591_v46, %v591_v46 }
  0x71   :  { %v540_v20 = vadd.f32 %v539_v45, %v538_v62  ;;  %v543_v19 = vsel %vm102_vm0, %v531_v43, 0.0  ;;  %v595_v28 = vsub.f32 %v584_v36, %v512_v30  ;;  %v600_v22 = vmul.f32 %v592_v5, %v592_v5 }
  0x72   :  { %477 = vadd.xlane.f32.xlu0 %v476_v3  ;;  %v601_v9 = vmul.f32 %v593_v7, %v593_v7  ;;  %v545_v33 = vsel %vm102_vm0, %v532_v29, 0.0  ;;  %v606_v58 = vsel %vm102_vm0, %v598_v11, 0.0  ;;  %v596_v51 = vsub.f32 %v585_v41, %v513_v4 }
  0x73   :  { %v542_v47 = vadd.f32 %v541_v54, %v540_v20  ;;  %v602_v60 = vmul.f32 %v594_v14, %v594_v14  ;;  %v607_v44 = vsel %vm102_vm0, %v599_v57, 0.0  ;;  %v609_v13 = vsel %vm102_vm0, %v600_v22, 0.0 }
  0x74   :  { %v608_v55 = vadd.f32 %v607_v44, %v606_v58  ;;  %v547_v61 = vsel %vm102_vm0, %v533_v10, 0.0  ;;  %v597_v37 = vsub.f32 %v586_v16, %v514_v1  ;;  %v603_v30 = vmul.f32 %v595_v28, %v595_v28 }
  0x75   :  { %v544_v24 = vadd.f32 %v543_v19, %v542_v47  ;;  %v611_v40 = vsel %vm102_vm0, %v601_v9, 0.0  ;;  %v604_v15 = vmul.f32 %v596_v51, %v596_v51  ;;  %v613_v38 = vsel %vm102_vm0, %v602_v60, 0.0 }
  0x76   :  { %v610_v26 = vadd.f32 %v609_v13, %v608_v55  ;;  %v605_v6 = vmul.f32 %v597_v37, %v597_v37  ;;  %v615_v0 = vsel %vm102_vm0, %v603_v30, 0.0 }
  0x77   :  { %v546_v63 = vadd.f32 %v545_v33, %v544_v24  ;;  %v617_v8 = vsel %vm102_vm0, %v604_v15, 0.0 }
  0x78   :  { %v612_v4 = vadd.f32 %v611_v40, %v610_v26  ;;  %v619_v1 = vsel %vm102_vm0, %v605_v6, 0.0 }
  0x79   :  { %v548_v2 = vadd.f32 %v547_v61, %v546_v63 }
  0x7a   :  { %v614_v12 = vadd.f32 %v613_v38, %v612_v4 }
  0x7b   :  { %549 = vadd.xlane.f32.xlu0 %v548_v2 }
  0x7c   :  { %v616_v56 = vadd.f32 %v615_v0, %v614_v12 }
  0x7e   :  { %v618_v42 = vadd.f32 %v617_v8, %v616_v56 }
  0x80   :  { %v620_v34 = vadd.f32 %v619_v1, %v618_v42 }
  0x82   :  { %621 = vadd.xlane.f32.xlu0 %v620_v34 }
  0xba   :  { %v208_v27 = vpop.xlane.xlu1 %207 }
  0xbb   :  { %v209_v53 = vrot.slane %v208_v27, 4 }
  0xbd   :  { %v210_v45 = vadd.f32 %v209_v53, %v208_v27 }
  0xbe   :  { %v280_v17 = vpop.xlane.xlu1 %279 }
  0xbf   :  { %v281_v23 = vrot.slane %v280_v17, 4  ;;  %v211_v41 = vrot.slane %v210_v45, 2 }
  0xc1   :  { %v282_v5 = vadd.f32 %v281_v23, %v280_v17  ;;  %v212_v13 = vadd.f32 %v211_v41, %v210_v45 }
  0xc2   :  { %v352_v59 = vpop.xlane.xlu1 %351 }
  0xc3   :  { %v353_v52 = vrot.slane %v352_v59, 4  ;;  %v283_v9 = vrot.slane %v282_v5, 2  ;;  %v213_v6 = vrot.slane %v212_v13, 1 }
  0xc4   :  { %v137_v39 = vpop.xlane.xlu0 %136 }
  0xc5   :  { %v138_v18 = vrot.slane %v137_v39, 4  ;;  %v354_v11 = vadd.f32 %v353_v52, %v352_v59  ;;  %v284_v63 = vadd.f32 %v283_v9, %v282_v5 }
  0xc7   :  { %v139_v25 = vadd.f32 %v138_v18, %v137_v39  ;;  %v355_v60 = vrot.slane %v354_v11, 2  ;;  %v285_v27 = vrot.slane %v284_v63, 1 }
  0xc9   :  { %v140_v7 = vrot.slane %v139_v25, 2  ;;  %v356_v12 = vadd.f32 %v355_v60, %v354_v11  ;;  %v286_v23 = vadd.f32 %v285_v27, %v284_v63 }
  0xcb   :  { %v424_v32 = vpop.xlane.xlu1 %423  ;;  %v141_v33 = vadd.f32 %v140_v7, %v139_v25 }
  0xcc   :  { %v425_v3 = vrot.slane %v424_v32, 4 }
  0xcd   :  { %v142_v40 = vrot.slane %v141_v33, 1 }
  0xce   :  { %v426_v47 = vadd.f32 %v425_v3, %v424_v32  ;;  %v214_v32 = vadd.f32 %v213_v6, %v212_v13 }
  0xcf   :  { %v143_v34 = vadd.f32 %v142_v40, %v141_v33 }
  0xd0   :  { %v427_v37 = vrot.slane %v426_v47, 2 }
  0xd2   :  { %v428_v17 = vadd.f32 %v427_v37, %v426_v47 }
  0xd3   :  { %v262_v48 = vpop.xlane.xlu0 %261 }
  0xd4   :  { %v263_v21 = vrot.slane %v262_v48, 4  ;;  %v429_v25 = vrot.slane %v428_v17, 1 }
  0xd6   :  { %v264_v62 = vadd.f32 %v263_v21, %v262_v48 }
  0xd8   :  { %v265_v57 = vrot.slane %v264_v62, 2 }
  0xda   :  { %v266_v24 = vadd.f32 %v265_v57, %v264_v62 }
  0xdc   :  { %v334_v49 = vpop.xlane.xlu0 %333  ;;  %v267_v0 = vrot.slane %v266_v24, 1 }
  0xdd   :  { %v335_v35 = vrot.slane %v334_v49, 4 }
  0xde   :  { %v268_v53 = vadd.f32 %v267_v0, %v266_v24 }
  0xdf   :  { %v336_v14 = vadd.f32 %v335_v35, %v334_v49  ;;  %v357_v49 = vrot.slane %v356_v12, 1 }
  0xe1   :  { %v337_v16 = vrot.slane %v336_v14, 2  ;;  %v358_v45 = vadd.f32 %v357_v49, %v356_v12 }
  0xe3   :  { %v338_v38 = vadd.f32 %v337_v16, %v336_v14 }
  0xe5   :  { %v190_v31 = vpop.xlane.xlu1 %189  ;;  %v339_v48 = vrot.slane %v338_v38, 1 }
  0xe6   :  { %v191_v50 = vrot.slane %v190_v31, 4 }
  0xe7   :  { %v340_v35 = vadd.f32 %v339_v48, %v338_v38 }
  0xe8   :  { %v192_v29 = vadd.f32 %v191_v50, %v190_v31 }
  0xe9   :  { %v496_v46 = vpop.xlane.xlu1 %495 }
  0xea   :  { %v193_v10 = vrot.slane %v192_v29, 2  ;;  %v497_v19 = vrot.slane %v496_v46, 4 }
  0xec   :  { %v406_v43 = vpop.xlane.xlu0 %405  ;;  %v194_v51 = vadd.f32 %v193_v10, %v192_v29  ;;  %v498_v44 = vadd.f32 %v497_v19, %v496_v46 }
  0xed   :  { %v407_v36 = vrot.slane %v406_v43, 4 }
  0xee   :  { %v568_v30 = vpop.xlane.xlu1 %567  ;;  %v195_v15 = vrot.slane %v194_v51, 1  ;;  %v499_v2 = vrot.slane %v498_v44, 2 }
  0xef   :  { %v408_v28 = vadd.f32 %v407_v36, %v406_v43  ;;  %v569_v8 = vrot.slane %v568_v30, 4 }
  0xf0   :  { %v196_v59 = vadd.f32 %v195_v15, %v194_v51  ;;  %v500_v31 = vadd.f32 %v499_v2, %v498_v44 }
  0xf1   :  { %v409_v55 = vrot.slane %v408_v28, 2  ;;  %v570_v18 = vadd.f32 %v569_v8, %v568_v30 }
  0xf2   :  { %v501_v52 = vrot.slane %v500_v31, 1 }
  0xf3   :  { %v410_v42 = vadd.f32 %v409_v55, %v408_v28  ;;  %v571_v62 = vrot.slane %v570_v18, 2 }
  0xf5   :  { %v119_v54 = vpop.xlane.xlu0 %118  ;;  %v411_v21 = vrot.slane %v410_v42, 1  ;;  %v572_v11 = vadd.f32 %v571_v62, %v570_v18 }
  0xf6   :  { %v120_v20 = vrot.slane %v119_v54, 4 }
  0xf7   :  { %v640_v43 = vpop.xlane.xlu1 %639  ;;  %v412_v5 = vadd.f32 %v411_v21, %v410_v42  ;;  %v573_v9 = vrot.slane %v572_v11, 1 }
  0xf8   :  { %v121_v22 = vadd.f32 %v120_v20, %v119_v54  ;;  %v641_v36 = vrot.slane %v640_v43, 4  ;;  %v430_v54 = vadd.f32 %v429_v25, %v428_v17  ;;  %v502_v20 = vadd.f32 %v501_v52, %v500_v31 }
  0xf9   :  { %v574_v60 = vadd.f32 %v573_v9, %v572_v11 }
  0xfa   :  { %v122_v58 = vrot.slane %v121_v22, 2  ;;  %v642_v41 = vadd.f32 %v641_v36, %v640_v43 }
  0xfc   :  { %v123_v61 = vadd.f32 %v122_v58, %v121_v22  ;;  %v643_v28 = vrot.slane %v642_v41, 2 }
  0xfe   :  { %v124_v26 = vrot.slane %v123_v61, 1  ;;  %v644_v51 = vadd.f32 %v643_v28, %v642_v41 }
  0xff   :  { %v478_v4 = vpop.xlane.xlu0 %477 }
 0x100   :  { %v479_v56 = vrot.slane %v478_v4, 4  ;;  %v125_v1 = vadd.f32 %v124_v26, %v123_v61  ;;  %v645_v24 = vrot.slane %v644_v51, 1 }
 0x102   :  { %v480_v39 = vadd.f32 %v479_v56, %v478_v4  ;;  %706 = vpush %v125_v1  ;;  %v646_v37 = vadd.f32 %v645_v24, %v644_v51 }
 0x103   :  { %708 = vpush %v143_v34 }
 0x104   :  { %v481_v50 = vrot.slane %v480_v39, 2  ;;  %710 = vpush %v196_v59 }
 0x105   :  { %712 = vpush %v214_v32 }
 0x106   :  { %714 = vpush %v268_v53  ;;  %v482_v29 = vadd.f32 %v481_v50, %v480_v39 }
 0x107   :  { %716 = vpush %v286_v23 }
 0x108   :  { %v550_v46 = vpop.xlane.xlu0 %549  ;;  %718 = vpush %v340_v35  ;;  %v483_v7 = vrot.slane %v482_v29, 1 }
 0x109   :  { %v551_v3 = vrot.slane %v550_v46, 4  ;;  %720 = vpush %v358_v45 }
 0x10a   :  { %722 = vpush %v412_v5  ;;  %v484_v14 = vadd.f32 %v483_v7, %v482_v29 }
 0x10b   :  { %v552_v10 = vadd.f32 %v551_v3, %v550_v46  ;;  %724 = vpush %v430_v54 }
 0x10c   :  { %726 = vpush %v484_v14 }
 0x10d   :  { %v553_v57 = vrot.slane %v552_v10, 2  ;;  %728 = vpush %v502_v20 }
 0x10f   :  { %v554_v19 = vadd.f32 %v553_v57, %v552_v10  ;;  %v622_v22 = vpop.xlane.xlu0 %621 }
 0x110   :  { %v623_v47 = vrot.slane %v622_v22, 4 }
 0x111   :  { %v555_v33 = vrot.slane %v554_v19, 1 }
 0x112   :  { %v624_v16 = vadd.f32 %v623_v47, %v622_v22 }
 0x113   :  { %v556_v58 = vadd.f32 %v555_v33, %v554_v19 }
 0x114   :  { %v625_v44 = vrot.slane %v624_v16, 2 }
 0x115   :  { %730 = vpush %v556_v58 }
 0x116   :  { %732 = vpush %v574_v60  ;;  %v626_v13 = vadd.f32 %v625_v44, %v624_v16 }
 0x118   :  { %v627_v55 = vrot.slane %v626_v13, 1 }
 0x11a   :  { %v628_v61 = vadd.f32 %v627_v55, %v626_v13 }
 0x11c   :  { %734 = vpush %v628_v61 }
 0x11d   :  { %736 = vpush %v646_v37 }
 0x133   :  { %s707_s1 = spop %706 }
 0x134   :  { %s709_s6 = spop %708 }
 0x135   :  { %s711_s7 = spop %710  ;;  %s145_s8 = smul.f32 %s709_s6, %s707_s1 }
 0x136   :  { %s713_s9 = spop %712 }
 0x137   :  { %s216_s10 = smul.f32 %s713_s9, %s711_s7  ;;  %s715_s11 = spop %714 }
 0x138   :  { %s717_s12 = spop %716  ;;  %s789_s9 = scalar_lea.hbm %s1185_s2, 16 }
 0x139   :  { %s217_s13 = sadd.f32 %s216_s10, %s145_s8  ;;  %s719_s14 = spop %718 }
 0x13a   :  { %s288_s15 = smul.f32 %s717_s12, %s715_s11  ;;  %s721_s16 = spop %720 }
 0x13b   :  { %s723_s18 = spop %722  ;;  %s360_s19 = smul.f32 %s721_s16, %s719_s14 }
 0x13c   :  { %s289_s17 = sadd.f32 %s288_s15, %s217_s13  ;;  %s725_s20 = spop %724 }
 0x13d   :  { %s727_s22 = spop %726  ;;  %s432_s23 = smul.f32 %s725_s20, %s723_s18 }
 0x13e   :  { %s361_s21 = sadd.f32 %s360_s19, %s289_s17  ;;  %s729_s24 = spop %728 }
 0x13f   :  { %s504_s27 = smul.f32 %s729_s24, %s727_s22  ;;  %p790_p2 = scmp.ne.s32.totalorder %s1185_s2, %s789_s9 }
 0x140   :  { %s433_s25 = sadd.f32 %s432_s23, %s361_s21  ;;  %p793_p3 = scmp.lt.u32.totalorder %s789_s9, %s1185_s2 }
 0x142   :  { %s505_s29 = sadd.f32 %s504_s27, %s433_s25  ;;  %p795_p4 = pnand %p793_p3, %p790_p2 }
 0x146   :  { %s731_s26 = spop %730 }
 0x147   :  { %s733_s28 = spop %732 }
 0x148   :  { %s576_s30 = smul.f32 %s733_s28, %s731_s26 }
 0x14a   :  { %s577_s3 = sadd.f32 %s576_s30, %s505_s29 }
 0x14d   :  { %s735_s4 = spop %734 }
 0x14e   :  { %s737_s0 = spop %736 }
 0x14f   :  { %s648_s5 = smul.f32 %s737_s0, %s735_s4 }
 0x151   :  { %s649_s1 = sadd.f32 %s648_s5, %s577_s3 }
 0x153   :  { %s651_s6 = smul.f32 9.536743e-07, %s649_s1 }
 0x155   :  { %654 = sst [smem:[#allocation9]] %s651_s6 }
 0x156   :  { %798 = shalt.err (!%p795_p4)
}
 0x157   :  { %s810_s14 = smov [#allocation9]  }
 0x158   :  { %682 = dma.smem_to_hbm %s810_s14, 16, %s1185_s2, [#allocation6]  }
 0x159   :  { %803 = dma.done.wait [#allocation6], 16  }
 0x15a   :  { %804 = vsyncadd [#allocation6], 4294967280 }
 0x15b   :  { %686 = sfence }
 0x15c   :  { %687 = vsyncpa [#allocation5], 1 }
 0x15d   :  { %688 = vsyncpa [#allocation8], 1 }
 0x15e   :  { %689 = vsyncpa [#allocation6], 1 }

</bundles_post_ra>
